<compile_context>
chip_gen: v7x
topology: tpu7x:2x2x1
jax: 0.10.0
libtpu: 0.0.40
codegen_flags: <defaults>
</compile_context>

<pallas_src>
import functools

import jax
import jax.numpy as jnp
from jax.experimental import pallas as pl
from jax.experimental.pallas import tpu as pltpu

LANE = 128
SUBLANE = 8
_NEG_INF = -1e30


def _round_up(n, m):
    return ((n + m - 1) // m) * m


def _pad_to(a, axis, target):
    pad = target - a.shape[axis]
    if pad <= 0:
        return a
    widths = [(0, 0)] * a.ndim
    widths[axis] = (0, pad)
    return jnp.pad(a, widths)


def _pick_tm(M):
    """Row tile: >=2 tiles when possible (v7x megacore), multiple of 8, capped at 512."""
    half = -(-M // 2)
    tm = _round_up(max(half, SUBLANE), SUBLANE)
    return min(512, tm)


def moe_kernel(x_ref, wg_ref, bg_ref, w1_ref, b1_ref, w2_ref, b2_ref, o_ref,
               *, num_experts):
    x = x_ref[...]                                          # (tm, kp) bf16

    # ---- gating: softmax(x @ Wg + bg) over the real expert lanes only ----
    logits = jnp.dot(x, wg_ref[...],
                     preferred_element_type=jnp.float32) + bg_ref[...]
    lane = jax.lax.broadcasted_iota(jnp.int32, logits.shape, 1)
    logits = jnp.where(lane < num_experts, logits, _NEG_INF)
    m = jnp.max(logits, axis=-1, keepdims=True)
    p = jnp.exp(logits - m)
    probs = p / jnp.sum(p, axis=-1, keepdims=True)          # (tm, eg) f32

    # ---- all experts: statically unrolled, weights VMEM-resident ----
    acc = jnp.zeros(o_ref.shape, jnp.float32)
    for e in range(num_experts):                            # E is small and static
        h = jnp.dot(x, w1_ref[e], preferred_element_type=jnp.float32)
        h = jnp.maximum(h + b1_ref[e], 0.0)                 # bias + ReLU in f32
        y = jnp.dot(h.astype(w2_ref.dtype), w2_ref[e],
                    preferred_element_type=jnp.float32)
        y = y + b2_ref[e]
        acc = acc + probs[:, e:e + 1] * y                   # single-column gate read

    o_ref[...] = acc.astype(o_ref.dtype)


def moe_forward(x, wg, bg, w1, b1, w2, b2, *, tm=None):
    """Fused MoE forward.

    x : (M, D_in)             wg: (D_in, E)        bg: (E,)
    w1: (E, D_in, D_out)      b1: (E, D_out)
    w2: (E, D_out, D_out)     b2: (E, D_out)
    returns (M, D_out) = sum_e softmax(x @ wg + bg)[:, e:e+1] * Expert_e(x)
    """
    M, d_in = x.shape
    num_experts, _, d_out = w1.shape

    if tm is None:
        tm = _pick_tm(M)
    mp = _round_up(max(M, tm), tm)
    kp = _round_up(d_in, LANE)
    np_ = _round_up(d_out, LANE)
    eg = _round_up(num_experts, LANE)

    # Lane-dense, zero-padded operands; bf16 for MXU inputs, f32 biases.
    xp = _pad_to(_pad_to(x, 0, mp), 1, kp).astype(jnp.bfloat16)
    wgp = _pad_to(_pad_to(wg, 0, kp), 1, eg).astype(jnp.bfloat16)
    bgp = _pad_to(bg.reshape(1, -1), 1, eg).astype(jnp.float32)
    w1p = _pad_to(_pad_to(w1, 1, kp), 2, np_).astype(jnp.bfloat16)
    b1p = _pad_to(b1, 1, np_).astype(jnp.float32).reshape(num_experts, 1, np_)
    w2p = _pad_to(_pad_to(w2, 1, np_), 2, np_).astype(jnp.bfloat16)
    b2p = _pad_to(b2, 1, np_).astype(jnp.float32).reshape(num_experts, 1, np_)

    mt = mp // tm
    flops = mt * (2 * tm * kp * eg
                  + num_experts * (2 * tm * kp * np_ + 2 * tm * np_ * np_))
    # Weights/biases are fetched once (constant block index), x/out per row tile.
    bytes_accessed = (xp.size * 2 + mp * np_ * 4
                      + wgp.size * 2 + bgp.size * 4
                      + w1p.size * 2 + b1p.size * 4
                      + w2p.size * 2 + b2p.size * 4)

    out_padded = pl.pallas_call(
        functools.partial(moe_kernel, num_experts=num_experts),
        out_shape=jax.ShapeDtypeStruct((mp, np_), jnp.float32),
        grid_spec=pltpu.PrefetchScalarGridSpec(
            num_scalar_prefetch=0,
            grid=(mt,),
            in_specs=[
                pl.BlockSpec((tm, kp), lambda i: (i, 0)),                  # x tile
                pl.BlockSpec((kp, eg), lambda i: (0, 0)),                  # gating W
                pl.BlockSpec((1, eg), lambda i: (0, 0)),                   # gating b
                pl.BlockSpec((num_experts, kp, np_), lambda i: (0, 0, 0)),  # W1 stack
                pl.BlockSpec((num_experts, 1, np_), lambda i: (0, 0, 0)),   # b1 stack
                pl.BlockSpec((num_experts, np_, np_), lambda i: (0, 0, 0)),  # W2 stack
                pl.BlockSpec((num_experts, 1, np_), lambda i: (0, 0, 0)),   # b2 stack
            ],
            out_specs=pl.BlockSpec((tm, np_), lambda i: (i, 0)),
        ),
        compiler_params=pltpu.CompilerParams(
            dimension_semantics=("parallel",),
            vmem_limit_bytes=48 * 1024 * 1024,
        ),
        cost_estimate=pl.CostEstimate(
            flops=int(flops),
            transcendentals=int(mt * tm * eg),
            bytes_accessed=int(bytes_accessed),
        ),
    )(xp, wgp, bgp, w1p, b1p, w2p, b2p)

    return out_padded[:M, :d_out]


def init_moe_params(key, input_dim, output_dim, num_experts, dtype=jnp.float32):
    """PyTorch nn.Linear-style init: U[-1/sqrt(fan_in), 1/sqrt(fan_in)]."""
    keys = jax.random.split(key, 6)
    bi = 1.0 / (input_dim ** 0.5)
    bo = 1.0 / (output_dim ** 0.5)
    wg = jax.random.uniform(keys[0], (input_dim, num_experts), dtype, -bi, bi)
    bg = jax.random.uniform(keys[1], (num_experts,), dtype, -bi, bi)
    w1 = jax.random.uniform(keys[2], (num_experts, input_dim, output_dim), dtype, -bi, bi)
    b1 = jax.random.uniform(keys[3], (num_experts, output_dim), dtype, -bi, bi)
    w2 = jax.random.uniform(keys[4], (num_experts, output_dim, output_dim), dtype, -bo, bo)
    b2 = jax.random.uniform(keys[5], (num_experts, output_dim), dtype, -bo, bo)
    return wg, bg, w1, b1, w2, b2


def moe_reference(x, wg, bg, w1, b1, w2, b2):
    """Plain-JAX reference with the same bf16-matmul / f32-accumulate semantics."""
    xb = x.astype(jnp.bfloat16)
    logits = jnp.dot(xb, wg.astype(jnp.bfloat16),
                     preferred_element_type=jnp.float32) + bg[None, :]
    probs = jax.nn.softmax(logits, axis=-1)                       # (M, E)

    def one_expert(w1e, b1e, w2e, b2e):
        h = jnp.dot(xb, w1e.astype(jnp.bfloat16),
                    preferred_element_type=jnp.float32) + b1e[None, :]
        h = jnp.maximum(h, 0.0)
        return jnp.dot(h.astype(jnp.bfloat16), w2e.astype(jnp.bfloat16),
                       preferred_element_type=jnp.float32) + b2e[None, :]

    expert_out = jax.vmap(one_expert)(w1, b1, w2, b2)             # (E, M, D_out)
    return jnp.einsum("me,emd->md", probs, expert_out.astype(jnp.float32))


if __name__ == "__main__":
    key = jax.random.PRNGKey(0)
    kx1, kx2, kp = jax.random.split(key, 3)

    # Small shapes consistent with SEFT's fusion stage:
    #   text_features:      (batch, num_days, embedding_dim)
    #   technical_features: (batch, num_days, lstm_hidden_dim)
    batch, num_days = 2, 8
    embedding_dim = 32
    lstm_hidden_dim = 32
    output_dim = 32
    num_experts = 5
    input_dim = embedding_dim + lstm_hidden_dim

    text_features = jax.random.normal(kx1, (batch, num_days, embedding_dim), jnp.float32)
    technical_features = jax.random.normal(kx2, (batch, num_days, lstm_hidden_dim), jnp.float32)

    # TODO(synk): the embedding lookup, TransformerTextEncoder and StockPriceLSTM front-ends of SEFT are not Pallas kernels here; this kernel covers the MixtureOfExperts fusion module.
    x = jnp.concatenate([text_features, technical_features], axis=-1)
    x2d = x.reshape(-1, input_dim)                                # (batch*num_days, D_in)

    wg, bg, w1, b1, w2, b2 = init_moe_params(kp, input_dim, output_dim, num_experts)

    out = moe_forward(x2d, wg, bg, w1, b1, w2, b2)
    out = out.reshape(batch, num_days, output_dim)
    jax.block_until_ready(out)

    ref = moe_reference(x2d, wg, bg, w1, b1, w2, b2).reshape(batch, num_days, output_dim)
    assert out.shape == (batch, num_days, output_dim)
    assert jnp.allclose(out, ref, atol=2e-3, rtol=2e-3), float(jnp.max(jnp.abs(out - ref)))

    print("KERNEL_OK")
</pallas_src>

<mosaic_0001>
module attributes {stable_mosaic.version = 11 : i64} {
  func.func @moe_kernel(%arg0: i32, %arg1: memref<8x128xbf16, #tpu.memory_space<vmem>>, %arg2: memref<128x128xbf16, #tpu.memory_space<vmem>>, %arg3: memref<1x128xf32, #tpu.memory_space<vmem>>, %arg4: memref<5x128x128xbf16, #tpu.memory_space<vmem>>, %arg5: memref<5x1x128xf32, #tpu.memory_space<vmem>>, %arg6: memref<5x128x128xbf16, #tpu.memory_space<vmem>>, %arg7: memref<5x1x128xf32, #tpu.memory_space<vmem>>, %arg8: memref<8x128xf32, #tpu.memory_space<vmem>>) attributes {dimension_semantics = [#tpu.dimension_semantics<parallel>], iteration_bounds = array<i64: 2>, scalar_prefetch = 0 : i64, scratch_operands = 0 : i64, tpu.core_type = #tpu.core_type<tc>, window_params = [{transform_indices = @transform_0, window_bounds = array<i64: 8, 128>}, {pipeline_mode = #tpu.pipeline_mode<synchronous>, transform_indices = @transform_1, window_bounds = array<i64: 128, 128>}, {pipeline_mode = #tpu.pipeline_mode<synchronous>, transform_indices = @transform_2, window_bounds = array<i64: 1, 128>}, {pipeline_mode = #tpu.pipeline_mode<synchronous>, transform_indices = @transform_3, window_bounds = array<i64: 5, 128, 128>}, {pipeline_mode = #tpu.pipeline_mode<synchronous>, transform_indices = @transform_4, window_bounds = array<i64: 5, 1, 128>}, {pipeline_mode = #tpu.pipeline_mode<synchronous>, transform_indices = @transform_5, window_bounds = array<i64: 5, 128, 128>}, {pipeline_mode = #tpu.pipeline_mode<synchronous>, transform_indices = @transform_6, window_bounds = array<i64: 5, 1, 128>}, {transform_indices = @transform_7, window_bounds = array<i64: 8, 128>}]} {
    %c0 = arith.constant 0 : index
    %c0_0 = arith.constant 0 : index
    %0 = vector.load %arg1[%c0, %c0_0] : memref<8x128xbf16, #tpu.memory_space<vmem>>, vector<8x128xbf16>
    %c0_1 = arith.constant 0 : index
    %c0_2 = arith.constant 0 : index
    %1 = vector.load %arg2[%c0_1, %c0_2] : memref<128x128xbf16, #tpu.memory_space<vmem>>, vector<128x128xbf16>
    %cst = arith.constant dense<0.000000e+00> : vector<8x128xf32>
    %2 = tpu.matmul %0, %1, %cst {dimension_numbers = #tpu.dot_dimension_numbers<[1], [0], [0], [1], [0, 0, 1, 1], [], []>} : vector<8x128xbf16>, vector<128x128xbf16>, vector<8x128xf32> -> vector<8x128xf32>
    %c0_3 = arith.constant 0 : index
    %c0_4 = arith.constant 0 : index
    %3 = vector.load %arg3[%c0_3, %c0_4] : memref<1x128xf32, #tpu.memory_space<vmem>>, vector<1x128xf32>
    %4 = vector.broadcast %3 : vector<1x128xf32> to vector<8x128xf32>
    %5 = arith.addf %2, %4 : vector<8x128xf32>
    %6 = tpu.iota {dimensions = array<i32: 1>} : vector<8x128xi32>
    %c5_i32 = arith.constant 5 : i32
    %7 = vector.broadcast %c5_i32 : i32 to vector<8x128xi32>
    %8 = arith.cmpi slt, %6, %7 : vector<8x128xi32>
    %cst_5 = arith.constant -1.000000e+30 : f32
    %9 = vector.broadcast %cst_5 : f32 to vector<8x128xf32>
    %10 = arith.select %8, %5, %9 : vector<8x128xi1>, vector<8x128xf32>
    %cst_6 = arith.constant dense<0xFF800000> : vector<8xf32>
    %11 = vector.multi_reduction <maximumf>, %10, %cst_6 [1] : vector<8x128xf32> to vector<8xf32>
    %12 = vector.shape_cast %11 : vector<8xf32> to vector<8x1xf32>
    %13 = vector.broadcast %12 : vector<8x1xf32> to vector<8x128xf32>
    %14 = arith.subf %10, %13 : vector<8x128xf32>
    %15 = math.exp %14 : vector<8x128xf32>
    %cst_7 = arith.constant dense<0.000000e+00> : vector<8xf32>
    %16 = vector.multi_reduction <add>, %15, %cst_7 [1] : vector<8x128xf32> to vector<8xf32>
    %17 = vector.shape_cast %16 : vector<8xf32> to vector<8x1xf32>
    %18 = vector.broadcast %17 : vector<8x1xf32> to vector<8x128xf32>
    %19 = arith.divf %15, %18 : vector<8x128xf32>
    %cst_8 = arith.constant 0.000000e+00 : f32
    %20 = vector.broadcast %cst_8 : f32 to vector<8x128xf32>
    %c0_9 = arith.constant 0 : index
    %c0_10 = arith.constant 0 : index
    %c0_11 = arith.constant 0 : index
    %21 = vector.load %arg4[%c0_9, %c0_10, %c0_11] : memref<5x128x128xbf16, #tpu.memory_space<vmem>>, vector<1x128x128xbf16>
    %22 = vector.shape_cast %21 : vector<1x128x128xbf16> to vector<128x128xbf16>
    %cst_12 = arith.constant dense<0.000000e+00> : vector<8x128xf32>
    %23 = tpu.matmul %0, %22, %cst_12 {dimension_numbers = #tpu.dot_dimension_numbers<[1], [0], [0], [1], [0, 0, 1, 1], [], []>} : vector<8x128xbf16>, vector<128x128xbf16>, vector<8x128xf32> -> vector<8x128xf32>
    %c0_13 = arith.constant 0 : index
    %c0_14 = arith.constant 0 : index
    %c0_15 = arith.constant 0 : index
    %24 = vector.load %arg5[%c0_13, %c0_14, %c0_15] : memref<5x1x128xf32, #tpu.memory_space<vmem>>, vector<1x1x128xf32>
    %25 = vector.shape_cast %24 : vector<1x1x128xf32> to vector<1x128xf32>
    %26 = vector.broadcast %25 : vector<1x128xf32> to vector<8x128xf32>
    %27 = arith.addf %23, %26 : vector<8x128xf32>
    %cst_16 = arith.constant 0.000000e+00 : f32
    %28 = vector.broadcast %cst_16 : f32 to vector<8x128xf32>
    %29 = arith.maximumf %27, %28 : vector<8x128xf32>
    %30 = arith.truncf %29 : vector<8x128xf32> to vector<8x128xbf16>
    %c0_17 = arith.constant 0 : index
    %c0_18 = arith.constant 0 : index
    %c0_19 = arith.constant 0 : index
    %31 = vector.load %arg6[%c0_17, %c0_18, %c0_19] : memref<5x128x128xbf16, #tpu.memory_space<vmem>>, vector<1x128x128xbf16>
    %32 = vector.shape_cast %31 : vector<1x128x128xbf16> to vector<128x128xbf16>
    %cst_20 = arith.constant dense<0.000000e+00> : vector<8x128xf32>
    %33 = tpu.matmul %30, %32, %cst_20 {dimension_numbers = #tpu.dot_dimension_numbers<[1], [0], [0], [1], [0, 0, 1, 1], [], []>} : vector<8x128xbf16>, vector<128x128xbf16>, vector<8x128xf32> -> vector<8x128xf32>
    %c0_21 = arith.constant 0 : index
    %c0_22 = arith.constant 0 : index
    %c0_23 = arith.constant 0 : index
    %34 = vector.load %arg7[%c0_21, %c0_22, %c0_23] : memref<5x1x128xf32, #tpu.memory_space<vmem>>, vector<1x1x128xf32>
    %35 = vector.shape_cast %34 : vector<1x1x128xf32> to vector<1x128xf32>
    %36 = vector.broadcast %35 : vector<1x128xf32> to vector<8x128xf32>
    %37 = arith.addf %33, %36 : vector<8x128xf32>
    %38 = vector.extract_strided_slice %19 {offsets = [0, 0], sizes = [8, 1], strides = [1, 1]} : vector<8x128xf32> to vector<8x1xf32>
    %39 = vector.broadcast %38 : vector<8x1xf32> to vector<8x128xf32>
    %40 = arith.mulf %39, %37 : vector<8x128xf32>
    %41 = arith.addf %20, %40 : vector<8x128xf32>
    %c1 = arith.constant 1 : index
    %c0_24 = arith.constant 0 : index
    %c0_25 = arith.constant 0 : index
    %42 = vector.load %arg4[%c1, %c0_24, %c0_25] : memref<5x128x128xbf16, #tpu.memory_space<vmem>>, vector<1x128x128xbf16>
    %43 = vector.shape_cast %42 : vector<1x128x128xbf16> to vector<128x128xbf16>
    %cst_26 = arith.constant dense<0.000000e+00> : vector<8x128xf32>
    %44 = tpu.matmul %0, %43, %cst_26 {dimension_numbers = #tpu.dot_dimension_numbers<[1], [0], [0], [1], [0, 0, 1, 1], [], []>} : vector<8x128xbf16>, vector<128x128xbf16>, vector<8x128xf32> -> vector<8x128xf32>
    %c1_27 = arith.constant 1 : index
    %c0_28 = arith.constant 0 : index
    %c0_29 = arith.constant 0 : index
    %45 = vector.load %arg5[%c1_27, %c0_28, %c0_29] : memref<5x1x128xf32, #tpu.memory_space<vmem>>, vector<1x1x128xf32>
    %46 = vector.shape_cast %45 : vector<1x1x128xf32> to vector<1x128xf32>
    %47 = vector.broadcast %46 : vector<1x128xf32> to vector<8x128xf32>
    %48 = arith.addf %44, %47 : vector<8x128xf32>
    %cst_30 = arith.constant 0.000000e+00 : f32
    %49 = vector.broadcast %cst_30 : f32 to vector<8x128xf32>
    %50 = arith.maximumf %48, %49 : vector<8x128xf32>
    %51 = arith.truncf %50 : vector<8x128xf32> to vector<8x128xbf16>
    %c1_31 = arith.constant 1 : index
    %c0_32 = arith.constant 0 : index
    %c0_33 = arith.constant 0 : index
    %52 = vector.load %arg6[%c1_31, %c0_32, %c0_33] : memref<5x128x128xbf16, #tpu.memory_space<vmem>>, vector<1x128x128xbf16>
    %53 = vector.shape_cast %52 : vector<1x128x128xbf16> to vector<128x128xbf16>
    %cst_34 = arith.constant dense<0.000000e+00> : vector<8x128xf32>
    %54 = tpu.matmul %51, %53, %cst_34 {dimension_numbers = #tpu.dot_dimension_numbers<[1], [0], [0], [1], [0, 0, 1, 1], [], []>} : vector<8x128xbf16>, vector<128x128xbf16>, vector<8x128xf32> -> vector<8x128xf32>
    %c1_35 = arith.constant 1 : index
    %c0_36 = arith.constant 0 : index
    %c0_37 = arith.constant 0 : index
    %55 = vector.load %arg7[%c1_35, %c0_36, %c0_37] : memref<5x1x128xf32, #tpu.memory_space<vmem>>, vector<1x1x128xf32>
    %56 = vector.shape_cast %55 : vector<1x1x128xf32> to vector<1x128xf32>
    %57 = vector.broadcast %56 : vector<1x128xf32> to vector<8x128xf32>
    %58 = arith.addf %54, %57 : vector<8x128xf32>
    %59 = vector.extract_strided_slice %19 {offsets = [0, 1], sizes = [8, 1], strides = [1, 1]} : vector<8x128xf32> to vector<8x1xf32>
    %60 = vector.broadcast %59 : vector<8x1xf32> to vector<8x128xf32>
    %61 = arith.mulf %60, %58 : vector<8x128xf32>
    %62 = arith.addf %41, %61 : vector<8x128xf32>
    %c2 = arith.constant 2 : index
    %c0_38 = arith.constant 0 : index
    %c0_39 = arith.constant 0 : index
    %63 = vector.load %arg4[%c2, %c0_38, %c0_39] : memref<5x128x128xbf16, #tpu.memory_space<vmem>>, vector<1x128x128xbf16>
    %64 = vector.shape_cast %63 : vector<1x128x128xbf16> to vector<128x128xbf16>
    %cst_40 = arith.constant dense<0.000000e+00> : vector<8x128xf32>
    %65 = tpu.matmul %0, %64, %cst_40 {dimension_numbers = #tpu.dot_dimension_numbers<[1], [0], [0], [1], [0, 0, 1, 1], [], []>} : vector<8x128xbf16>, vector<128x128xbf16>, vector<8x128xf32> -> vector<8x128xf32>
    %c2_41 = arith.constant 2 : index
    %c0_42 = arith.constant 0 : index
    %c0_43 = arith.constant 0 : index
    %66 = vector.load %arg5[%c2_41, %c0_42, %c0_43] : memref<5x1x128xf32, #tpu.memory_space<vmem>>, vector<1x1x128xf32>
    %67 = vector.shape_cast %66 : vector<1x1x128xf32> to vector<1x128xf32>
    %68 = vector.broadcast %67 : vector<1x128xf32> to vector<8x128xf32>
    %69 = arith.addf %65, %68 : vector<8x128xf32>
    %cst_44 = arith.constant 0.000000e+00 : f32
    %70 = vector.broadcast %cst_44 : f32 to vector<8x128xf32>
    %71 = arith.maximumf %69, %70 : vector<8x128xf32>
    %72 = arith.truncf %71 : vector<8x128xf32> to vector<8x128xbf16>
    %c2_45 = arith.constant 2 : index
    %c0_46 = arith.constant 0 : index
    %c0_47 = arith.constant 0 : index
    %73 = vector.load %arg6[%c2_45, %c0_46, %c0_47] : memref<5x128x128xbf16, #tpu.memory_space<vmem>>, vector<1x128x128xbf16>
    %74 = vector.shape_cast %73 : vector<1x128x128xbf16> to vector<128x128xbf16>
    %cst_48 = arith.constant dense<0.000000e+00> : vector<8x128xf32>
    %75 = tpu.matmul %72, %74, %cst_48 {dimension_numbers = #tpu.dot_dimension_numbers<[1], [0], [0], [1], [0, 0, 1, 1], [], []>} : vector<8x128xbf16>, vector<128x128xbf16>, vector<8x128xf32> -> vector<8x128xf32>
    %c2_49 = arith.constant 2 : index
    %c0_50 = arith.constant 0 : index
    %c0_51 = arith.constant 0 : index
    %76 = vector.load %arg7[%c2_49, %c0_50, %c0_51] : memref<5x1x128xf32, #tpu.memory_space<vmem>>, vector<1x1x128xf32>
    %77 = vector.shape_cast %76 : vector<1x1x128xf32> to vector<1x128xf32>
    %78 = vector.broadcast %77 : vector<1x128xf32> to vector<8x128xf32>
    %79 = arith.addf %75, %78 : vector<8x128xf32>
    %80 = vector.extract_strided_slice %19 {offsets = [0, 2], sizes = [8, 1], strides = [1, 1]} : vector<8x128xf32> to vector<8x1xf32>
    %81 = vector.broadcast %80 : vector<8x1xf32> to vector<8x128xf32>
    %82 = arith.mulf %81, %79 : vector<8x128xf32>
    %83 = arith.addf %62, %82 : vector<8x128xf32>
    %c3 = arith.constant 3 : index
    %c0_52 = arith.constant 0 : index
    %c0_53 = arith.constant 0 : index
    %84 = vector.load %arg4[%c3, %c0_52, %c0_53] : memref<5x128x128xbf16, #tpu.memory_space<vmem>>, vector<1x128x128xbf16>
    %85 = vector.shape_cast %84 : vector<1x128x128xbf16> to vector<128x128xbf16>
    %cst_54 = arith.constant dense<0.000000e+00> : vector<8x128xf32>
    %86 = tpu.matmul %0, %85, %cst_54 {dimension_numbers = #tpu.dot_dimension_numbers<[1], [0], [0], [1], [0, 0, 1, 1], [], []>} : vector<8x128xbf16>, vector<128x128xbf16>, vector<8x128xf32> -> vector<8x128xf32>
    %c3_55 = arith.constant 3 : index
    %c0_56 = arith.constant 0 : index
    %c0_57 = arith.constant 0 : index
    %87 = vector.load %arg5[%c3_55, %c0_56, %c0_57] : memref<5x1x128xf32, #tpu.memory_space<vmem>>, vector<1x1x128xf32>
    %88 = vector.shape_cast %87 : vector<1x1x128xf32> to vector<1x128xf32>
    %89 = vector.broadcast %88 : vector<1x128xf32> to vector<8x128xf32>
    %90 = arith.addf %86, %89 : vector<8x128xf32>
    %cst_58 = arith.constant 0.000000e+00 : f32
    %91 = vector.broadcast %cst_58 : f32 to vector<8x128xf32>
    %92 = arith.maximumf %90, %91 : vector<8x128xf32>
    %93 = arith.truncf %92 : vector<8x128xf32> to vector<8x128xbf16>
    %c3_59 = arith.constant 3 : index
    %c0_60 = arith.constant 0 : index
    %c0_61 = arith.constant 0 : index
    %94 = vector.load %arg6[%c3_59, %c0_60, %c0_61] : memref<5x128x128xbf16, #tpu.memory_space<vmem>>, vector<1x128x128xbf16>
    %95 = vector.shape_cast %94 : vector<1x128x128xbf16> to vector<128x128xbf16>
    %cst_62 = arith.constant dense<0.000000e+00> : vector<8x128xf32>
    %96 = tpu.matmul %93, %95, %cst_62 {dimension_numbers = #tpu.dot_dimension_numbers<[1], [0], [0], [1], [0, 0, 1, 1], [], []>} : vector<8x128xbf16>, vector<128x128xbf16>, vector<8x128xf32> -> vector<8x128xf32>
    %c3_63 = arith.constant 3 : index
    %c0_64 = arith.constant 0 : index
    %c0_65 = arith.constant 0 : index
    %97 = vector.load %arg7[%c3_63, %c0_64, %c0_65] : memref<5x1x128xf32, #tpu.memory_space<vmem>>, vector<1x1x128xf32>
    %98 = vector.shape_cast %97 : vector<1x1x128xf32> to vector<1x128xf32>
    %99 = vector.broadcast %98 : vector<1x128xf32> to vector<8x128xf32>
    %100 = arith.addf %96, %99 : vector<8x128xf32>
    %101 = vector.extract_strided_slice %19 {offsets = [0, 3], sizes = [8, 1], strides = [1, 1]} : vector<8x128xf32> to vector<8x1xf32>
    %102 = vector.broadcast %101 : vector<8x1xf32> to vector<8x128xf32>
    %103 = arith.mulf %102, %100 : vector<8x128xf32>
    %104 = arith.addf %83, %103 : vector<8x128xf32>
    %c4 = arith.constant 4 : index
    %c0_66 = arith.constant 0 : index
    %c0_67 = arith.constant 0 : index
    %105 = vector.load %arg4[%c4, %c0_66, %c0_67] : memref<5x128x128xbf16, #tpu.memory_space<vmem>>, vector<1x128x128xbf16>
    %106 = vector.shape_cast %105 : vector<1x128x128xbf16> to vector<128x128xbf16>
    %cst_68 = arith.constant dense<0.000000e+00> : vector<8x128xf32>
    %107 = tpu.matmul %0, %106, %cst_68 {dimension_numbers = #tpu.dot_dimension_numbers<[1], [0], [0], [1], [0, 0, 1, 1], [], []>} : vector<8x128xbf16>, vector<128x128xbf16>, vector<8x128xf32> -> vector<8x128xf32>
    %c4_69 = arith.constant 4 : index
    %c0_70 = arith.constant 0 : index
    %c0_71 = arith.constant 0 : index
    %108 = vector.load %arg5[%c4_69, %c0_70, %c0_71] : memref<5x1x128xf32, #tpu.memory_space<vmem>>, vector<1x1x128xf32>
    %109 = vector.shape_cast %108 : vector<1x1x128xf32> to vector<1x128xf32>
    %110 = vector.broadcast %109 : vector<1x128xf32> to vector<8x128xf32>
    %111 = arith.addf %107, %110 : vector<8x128xf32>
    %cst_72 = arith.constant 0.000000e+00 : f32
    %112 = vector.broadcast %cst_72 : f32 to vector<8x128xf32>
    %113 = arith.maximumf %111, %112 : vector<8x128xf32>
    %114 = arith.truncf %113 : vector<8x128xf32> to vector<8x128xbf16>
    %c4_73 = arith.constant 4 : index
    %c0_74 = arith.constant 0 : index
    %c0_75 = arith.constant 0 : index
    %115 = vector.load %arg6[%c4_73, %c0_74, %c0_75] : memref<5x128x128xbf16, #tpu.memory_space<vmem>>, vector<1x128x128xbf16>
    %116 = vector.shape_cast %115 : vector<1x128x128xbf16> to vector<128x128xbf16>
    %cst_76 = arith.constant dense<0.000000e+00> : vector<8x128xf32>
    %117 = tpu.matmul %114, %116, %cst_76 {dimension_numbers = #tpu.dot_dimension_numbers<[1], [0], [0], [1], [0, 0, 1, 1], [], []>} : vector<8x128xbf16>, vector<128x128xbf16>, vector<8x128xf32> -> vector<8x128xf32>
    %c4_77 = arith.constant 4 : index
    %c0_78 = arith.constant 0 : index
    %c0_79 = arith.constant 0 : index
    %118 = vector.load %arg7[%c4_77, %c0_78, %c0_79] : memref<5x1x128xf32, #tpu.memory_space<vmem>>, vector<1x1x128xf32>
    %119 = vector.shape_cast %118 : vector<1x1x128xf32> to vector<1x128xf32>
    %120 = vector.broadcast %119 : vector<1x128xf32> to vector<8x128xf32>
    %121 = arith.addf %117, %120 : vector<8x128xf32>
    %122 = vector.extract_strided_slice %19 {offsets = [0, 4], sizes = [8, 1], strides = [1, 1]} : vector<8x128xf32> to vector<8x1xf32>
    %123 = vector.broadcast %122 : vector<8x1xf32> to vector<8x128xf32>
    %124 = arith.mulf %123, %121 : vector<8x128xf32>
    %125 = arith.addf %104, %124 : vector<8x128xf32>
    %c0_80 = arith.constant 0 : index
    %c0_81 = arith.constant 0 : index
    %126 = vector.load %arg8[%c0_80, %c0_81] : memref<8x128xf32, #tpu.memory_space<vmem>>, vector<8x128xf32>
    tpu.vector_store %arg8[%c0_80, %c0_81], %125 {strides = array<i32>} : memref<8x128xf32, #tpu.memory_space<vmem>>, vector<8x128xf32>,
    return
  }
  func.func @transform_0(%arg0: i32) -> (i32, i32) {
    %c0_i32 = arith.constant 0 : i32
    %c0_i32_0 = arith.constant 0 : i32
    return %arg0, %c0_i32 : i32, i32
  }
  func.func @transform_1(%arg0: i32) -> (i32, i32) {
    %c0_i32 = arith.constant 0 : i32
    %c0_i32_0 = arith.constant 0 : i32
    %c0_i32_1 = arith.constant 0 : i32
    return %c0_i32, %c0_i32_0 : i32, i32
  }
  func.func @transform_2(%arg0: i32) -> (i32, i32) {
    %c0_i32 = arith.constant 0 : i32
    %c0_i32_0 = arith.constant 0 : i32
    %c0_i32_1 = arith.constant 0 : i32
    return %c0_i32, %c0_i32_0 : i32, i32
  }
  func.func @transform_3(%arg0: i32) -> (i32, i32, i32) {
    %c0_i32 = arith.constant 0 : i32
    %c0_i32_0 = arith.constant 0 : i32
    %c0_i32_1 = arith.constant 0 : i32
    %c0_i32_2 = arith.constant 0 : i32
    return %c0_i32, %c0_i32_0, %c0_i32_1 : i32, i32, i32
  }
  func.func @transform_4(%arg0: i32) -> (i32, i32, i32) {
    %c0_i32 = arith.constant 0 : i32
    %c0_i32_0 = arith.constant 0 : i32
    %c0_i32_1 = arith.constant 0 : i32
    %c0_i32_2 = arith.constant 0 : i32
    return %c0_i32, %c0_i32_0, %c0_i32_1 : i32, i32, i32
  }
  func.func @transform_5(%arg0: i32) -> (i32, i32, i32) {
    %c0_i32 = arith.constant 0 : i32
    %c0_i32_0 = arith.constant 0 : i32
    %c0_i32_1 = arith.constant 0 : i32
    %c0_i32_2 = arith.constant 0 : i32
    return %c0_i32, %c0_i32_0, %c0_i32_1 : i32, i32, i32
  }
  func.func @transform_6(%arg0: i32) -> (i32, i32, i32) {
    %c0_i32 = arith.constant 0 : i32
    %c0_i32_0 = arith.constant 0 : i32
    %c0_i32_1 = arith.constant 0 : i32
    %c0_i32_2 = arith.constant 0 : i32
    return %c0_i32, %c0_i32_0, %c0_i32_1 : i32, i32, i32
  }
  func.func @transform_7(%arg0: i32) -> (i32, i32) {
    %c0_i32 = arith.constant 0 : i32
    %c0_i32_0 = arith.constant 0 : i32
    return %arg0, %c0_i32 : i32, i32
  }
}

</mosaic_0001>

<bundles_post_ra>
// kernel: tpu_custom_call.1
= control target key start
LH: loop header
LB: loop body
LE: loop exit
PB: predicated region body
PF: predicated region fallthrough
CT: control target
= control target key end

     0   :  { %12 = vsyncpa [#allocation3], 0  ;;  %s3039_s0 = inlined_call_operand.hbm [shape: bf16[16,128], index: 0, kind: input, shape index: {}]   ;;  %s3040_s1 = inlined_call_operand.hbm [shape: bf16[128,128], index: 1, kind: input, shape index: {}]   ;;  %s3041_s2 = inlined_call_operand.vmem [shape: f32[1,128], index: 2, kind: input, shape index: {}]   ;;  %s3042_s3 = inlined_call_operand.hbm [shape: bf16[5,128,128], index: 3, kind: input, shape index: {}]   ;;  %s3043_s4 = inlined_call_operand.vmem [shape: f32[5,1,128], index: 4, kind: input, shape index: {}]   ;;  %s3044_s5 = inlined_call_operand.hbm [shape: bf16[5,128,128], index: 5, kind: input, shape index: {}]   ;;  %s3045_s6 = inlined_call_operand.vmem [shape: f32[5,1,128], index: 6, kind: input, shape index: {}]   ;;  %s3046_s7 = inlined_call_operand.hbm [shape: f32[16,128], index: 7, kind: output, shape index: {}]  }
   0x1   :  { %14 = vsyncpa [#allocation3 + $0x1], 0 }
   0x2   :  { %15 = vsyncpa [#allocation6], 0 }
   0x3   :  { %16 = vsyncpa [#allocation9], 0 }
   0x4   :  { %17 = vsyncpa [#allocation4], 0 }
   0x5   :  { %19 = vsyncpa [#allocation4 + $0x1], 0  ;;  %s2617_s24 = smov 0   ;;  %s2619_s25 = smov 0  }
   0x6   :  { %s2621_s26 = smov 0   ;;  %s2623_s27 = smov 0  }
   0x7 LB: > { %s2638_s28 = sadd.s32 4294967295, %s2561_s27   ;;  %s1745_s29 = sadd.s32 4294967294, %s2561_s27   ;;  %s2561_s27 = sphi %s2623_s27, %s3072_s27   ;;  %s2557_s26 = sphi %s2621_s26, %s3071_s26   ;;  %s2553_s25 = sphi %s2619_s25, %s3070_s25   ;;  %s2549_s24 = sphi %s2617_s24, %s3069_s24  }
   0x8   : > { %p45_p0 = scmp.ne.s32.totalorder %s2553_s25, %s2549_s24  ;;  %p3047_p1 = scmp.eq.s32.totalorder %s2638_s28, 0 }
   0x9   : > { %p201_p3 = scmp.eq.s32.totalorder %s1745_s29, 1  ;;  %p1746_p5 = scmp.ge.s32.totalorder %s2561_s27, 1 }
   0xa   : > { %p2647_p4 = por %p3047_p1, %p45_p0  ;;  %p208_p7 = scmp.lt.s32.totalorder %s2561_s27, 3 }
   0xb   : > { %p2652_p6 = por %p201_p3, %p45_p0  ;;  %s2563_s10 = smov [#allocation5]  }
   0xc   : > { %s3051_s30 = scalar_select %p2647_p4, 1, 0 }
   0xd   : > { %s3052_s8 = scalar_select %p2652_p6, 1, 0 }
   0xe   : > { %p2657_p8 = pnand %p1746_p5, %p208_p7  ;;  %s220_s11 = sshll.u32 %s2563_s10, 4  ;;  %s2661_s11 = int_to_ptr.vmem [resolvable:$true] %s220_s11 }
   0xf   : > { %3053 = sst [smem:[#allocation15_spill]] %s3052_s8  ;;  %s2564_s13 = smov [#allocation7]  }
  0x10   : > { %s3054_s9 = scalar_select %p2657_p8, 1, 0 }
  0x11   : > { %p2205_p9 = pneg %p2657_p8  ;;  %s236_s14 = sshll.u32 %s2564_s13, 4  ;;  %s2672_s14 = int_to_ptr.vmem [resolvable:$true] %s236_s14 }
  0x12   : > { %s2565_s15 = smov [#allocation8]   ;;  %s2373_s19 = scalar_lea.hbm %s3040_s1, 1024 }
  0x13   : > { %p2668_p11 = pnand %p2205_p9, %p3047_p1  ;;  %s2674_s16 = sshll.u32 %s2565_s15, 4  ;;  %s253_s16 = int_to_ptr.vmem [resolvable:$true] %s2674_s16 }
  0x14   : > { %p2374_p12 = scmp.ne.s32.totalorder %s3040_s1, %s2373_s19  ;;  %p2380_p5 = scmp.lt.u32.totalorder %s2373_s19, %s3040_s1 }
  0x15   : > { %p2684_p13 = pneg %p2668_p11 }
  0x17   : > { %p2376_p0 = pnand %p2684_p13, %p2374_p12 }
  0x19   : > { %p2377_p3 = pneg %p2376_p0 }
  0x1b   : > { %p2382_p7 = pnand %p2380_p5, %p2377_p3 }
  0x1d   : > { %2385 = shalt.err (!%p2382_p7)
}
  0x1e   : > { %s2386_s10 = scalar_lea.vmem %s2661_s11, 1024  ;;  %p2394_p2 = scmp.lt.s32.totalorder %s2661_s11, %s2661_s11 }
  0x1f   : > { %p2387_p9 = scmp.ne.s32.totalorder %s2661_s11, %s2386_s10  ;;  %p2395_p6 = scmp.lt.s32.totalorder %s2386_s10, %s2386_s10 }
  0x21   : > { %p2389_p10 = pnand %p2387_p9, %p2684_p13  ;;  %p2396_p12 = por %p2395_p6, %p2394_p2 }
  0x23   : > { %p2390_p1 = pneg %p2389_p10 }
  0x25   : > { %p2397_p0 = pnand %p2396_p12, %p2390_p1 }
  0x27   : > { %2400 = shalt.err (!%p2397_p0)
}
  0x28   : > { %s2566_s13 = smov 64   ;;  %s2567_s15 = smov 4  }
  0x29   : > { %2208 = dma.hbm_to_vmem [thread:$0]  (!%p2668_p11), %s3040_s1, 1024, %s2661_s11, [#allocation6], %s2566_s13, %s2566_s13, %s2567_s15  }
  0x2a   : > { %s2401_s21 = scalar_lea.hbm %s3042_s3, 5120 }
  0x2b   : > { %p2402_p1 = scmp.ne.s32.totalorder %s3042_s3, %s2401_s21  ;;  %p2408_p10 = scmp.lt.u32.totalorder %s2401_s21, %s3042_s3 }
  0x2d   : > { %p2404_p2 = pnand %p2402_p1, %p2684_p13 }
  0x2f   : > { %p2405_p6 = pneg %p2404_p2 }
  0x31   : > { %p2410_p3 = pnand %p2408_p10, %p2405_p6 }
  0x33   : > { %2413 = shalt.err (!%p2410_p3)
}
  0x34   : > { %s2414_s11 = scalar_lea.vmem %s2672_s14, 5120  ;;  %p2422_p12 = scmp.lt.s32.totalorder %s2672_s14, %s2672_s14 }
  0x35   : > { %p2415_p5 = scmp.ne.s32.totalorder %s2672_s14, %s2414_s11  ;;  %p2423_p0 = scmp.lt.s32.totalorder %s2414_s11, %s2414_s11 }
  0x37   : > { %p2417_p7 = pnand %p2415_p5, %p2684_p13  ;;  %p2424_p1 = por %p2423_p0, %p2422_p12 }
  0x39   : > { %p2418_p9 = pneg %p2417_p7 }
  0x3b   : > { %p2425_p2 = pnand %p2424_p1, %p2418_p9 }
  0x3d   : > { %2428 = shalt.err (!%p2425_p2)
}
  0x3e   : > { %2211 = dma.hbm_to_vmem [thread:$0]  (!%p2668_p11), %s3042_s3, 5120, %s2672_s14, [#allocation6], %s2566_s13, %s2566_s13, %s2567_s15  }
  0x3f   : > { %s2429_s20 = scalar_lea.hbm %s3044_s5, 5120 }
  0x40   : > { %p2430_p6 = scmp.ne.s32.totalorder %s3044_s5, %s2429_s20  ;;  %p2436_p5 = scmp.lt.u32.totalorder %s2429_s20, %s3044_s5 }
  0x42   : > { %p2432_p10 = pnand %p2430_p6, %p2684_p13 }
  0x44   : > { %p2433_p3 = pneg %p2432_p10 }
  0x46   : > { %p2438_p7 = pnand %p2436_p5, %p2433_p3 }
  0x48   : > { %2441 = shalt.err (!%p2438_p7)
}
  0x49   : > { %s2442_s11 = scalar_lea.vmem %s253_s16, 5120  ;;  %p2450_p1 = scmp.lt.s32.totalorder %s253_s16, %s253_s16 }
  0x4a   : > { %p2443_p9 = scmp.ne.s32.totalorder %s253_s16, %s2442_s11  ;;  %p2451_p2 = scmp.lt.s32.totalorder %s2442_s11, %s2442_s11 }
  0x4c   : > { %p2445_p12 = pnand %p2443_p9, %p2684_p13  ;;  %p2452_p4 = por %p2451_p2, %p2450_p1 }
  0x4e   : > { %p2446_p0 = pneg %p2445_p12 }
  0x50   : > { %p2453_p8 = pnand %p2452_p4, %p2446_p0 }
  0x52   : > { %2456 = shalt.err (!%p2453_p8)
}
  0x53   : > { %2214 = dma.hbm_to_vmem [thread:$0]  (!%p2668_p11), %s3044_s5, 5120, %s253_s16, [#allocation9], %s2566_s13, %s2566_s13, %s2567_s15  }
  0x54   : > { %s2757_s22 = sadd.s32 1, %s2561_s27   ;;  %s32_s17 = sadd.s32 1, %s2557_s26 }
  0x55   : > { %s29_s12 = ssub.s32 %s2561_s27, %s2757_s22  ;;  %p39_p8 = scmp.ne.s32.totalorder %s2557_s26, %s2553_s25 }
  0x56   : > { %p30_p4 = scmp.eq.s32.totalorder %s29_s12, 0  ;;  %p40_p13 = scmp.eq.s32.totalorder %s2561_s27, 0 }
  0x57   : > { %p2226_p6 = scmp.lt.s32.totalorder %s2561_s27, 2  ;;  %p3057_p3 = scmp.eq.s32.totalorder %s2638_s28, 1 }
  0x58   : > { %s2767_s18 = scalar_select %p30_p4, %s2557_s26, %s32_s17  }
  0x59   : > { %p41_p10 = por %p40_p13, %p39_p8  ;;  %p2771_p5 = por %p3057_p3, %p39_p8 }
  0x5a   : > { %s269_s20 = sand.u32 1, %s2557_s26   ;;  %s1752_s21 = sshll.u32 %s2561_s27, 6 }
  0x5b   : > { %s1751_s16 = sshll.u32 %s269_s20, 2  ;;  %s2780_s23 = scalar_lea.hbm %s3039_s0, %s1752_s21 }
  0x5c   : > { %s273_s29 = scalar_lea.vmem [#allocation2], %s1751_s16  ;;  %p2782_p11 = pnand %p2226_p6, %p41_p10 }
  0x5d   : > { %s280_s10 = sshll.u32 %s273_s29, 4  ;;  %s270_s14 = scalar_lea.sflag [#allocation3], %s269_s20  ;;  %s2786_s10 = int_to_ptr.vmem [resolvable:$true] %s280_s10 }
  0x5e   : > { %s2457_s8 = scalar_lea.hbm %s2780_s23, 64  ;;  %p2459_p9 = pneg %p2782_p11 }
  0x5f   : > { %p2458_p7 = scmp.ne.s32.totalorder %s2780_s23, %s2457_s8  ;;  %s2462_s21 = scalar_lea.hbm %s3039_s0, 128 }
  0x60   : > { %p2463_p1 = scmp.lt.u32.totalorder %s2780_s23, %s3039_s0  ;;  %p2464_p2 = scmp.lt.u32.totalorder %s2462_s21, %s2457_s8 }
  0x61   : > { %p2460_p12 = pnand %p2459_p9, %p2458_p7  ;;  %p2466_p8 = scmp.lt.u32.totalorder %s2457_s8, %s2780_s23 }
  0x62   : > { %p2465_p4 = por %p2464_p2, %p2463_p1 }
  0x63   : > { %p2461_p0 = pneg %p2460_p12 }
  0x64   : > { %p2467_p13 = por %p2466_p8, %p2465_p4 }
  0x66   : > { %p2468_p6 = pnand %p2467_p13, %p2461_p0 }
  0x68   : > { %2471 = shalt.err (!%p2468_p6)
}
  0x69   : > { %s2472_s20 = scalar_lea.vmem %s2786_s10, 64  ;;  %s2568_s15 = smov [#allocation2]  }
  0x6a   : > { %p2473_p10 = scmp.ne.s32.totalorder %s2786_s10, %s2472_s20  ;;  %s2477_s29 = sshll.u32 %s2568_s15, 4  ;;  %s2478_s29 = int_to_ptr.vmem [resolvable:$false] %s2477_s29 }
  0x6b   : > { %s2479_s12 = scalar_lea.vmem %s2478_s29, 128  ;;  %p2480_p12 = scmp.lt.s32.totalorder %s2786_s10, %s2478_s29 }
  0x6c   : > { %p2475_p3 = pnand %p2473_p10, %p2459_p9  ;;  %p2481_p1 = scmp.lt.s32.totalorder %s2479_s12, %s2472_s20 }
  0x6e   : > { %p2476_p7 = pneg %p2475_p3  ;;  %p2482_p2 = por %p2481_p1, %p2480_p12 }
  0x70   : > { %p2483_p4 = pnand %p2482_p2, %p2476_p7 }
  0x72   : > { %2486 = shalt.err (!%p2483_p4)
}
  0x73   : > { %2218 = dma.hbm_to_vmem [thread:$0]  (!%p2782_p11), %s2780_s23, 64, %s2786_s10, %s270_s14  }
  0x74   : > { %p3060_p0 = scmp.ne.s32.totalorder %s3054_s9, 0 }
  0x75   : > { %s2816_s8 = sand.u32 (!%p3060_p0), 1, %s2553_s25   ;;  %p3061_p9 = scmp.ne.s32.totalorder (!%p3060_p0), %s3051_s30, 0 }
  0x76   : > { %289 = sbr.rel (%p3060_p0) target bundleno = 855 (0x357), region = 48  ;;  %s1754_s17 = sshll.u32 (!%p3060_p0), %s2816_s8, 2 }
  0x77   : > { %s292_s21 = scalar_lea.sflag (!%p3060_p0), [#allocation3], %s2816_s8  ;;  %s2820_s16 = scalar_lea.vmem (!%p3060_p0), [#allocation2], %s1754_s17 }
  0x7d   : > { %2532 = dma.done.wait (%p3061_p9), %s292_s21, 64  }
  0x7e   : > { %2534 = vsyncadd (%p3061_p9), %s292_s21, 4294967232  ;;  %p3062_p11 = scmp.eq.s32.totalorder %s2638_s28, 0 }
  0x80   : > { %2536 = dma.done.wait (%p3062_p11), [#allocation6], 6144   ;;  %p3063_p8 = pmov %p3062_p11 }
  0x82   : > { %2538 = vsyncadd (%p3063_p8), [#allocation6], 4294961152  ;;  %p3064_p13 = pmov %p3063_p8 }
  0x83   : > { %p3065_p6 = pmov %p3063_p8 }
  0x84   : > { %2540 = dma.done.wait (%p3064_p13), [#allocation9], 5120  }
  0x85   : > { %2542 = vsyncadd (%p3065_p6), [#allocation9], 4294962176  ;;  %v2569_v0 = vmov 0.0   ;;  %vm2570_vm0 = vmmov 0   ;;  %v2281_v1 = vld [vmem:[#allocation5] sm:$0xff]   ;;  %v2282_v2 = vld [vmem:[#allocation5 + $0x8] sm:$0xff]   ;;  %v451_v58 = vlaneseq }
  0x86   : > { %1969 = vmatprep.subr.bf16.mxu0 %v2569_v0  ;;  %1985 = vmatprep.mubr.msk.bf16.mxu0 %vm2570_vm0, %v2569_v0  ;;  %v2283_v3 = vld [vmem:[#allocation5 + $0x10] sm:$0xff]   ;;  %v2289_v4 = vld [vmem:[#allocation7] sm:$0xff]   ;;  %v2284_v5 = vld [vmem:[#allocation5 + $0x18] sm:$0xff]   ;;  %s1758_s15 = sshll.u32 %s2816_s8, 3  ;;  %s1867_s29 = sshll.u32 %s2638_s28, 7 }
  0x87   : > { %1989 = vmatprep.subr.bf16.mxu1 %v2569_v0  ;;  %2005 = vmatprep.mubr.msk.bf16.mxu1 %vm2570_vm0, %v2569_v0  ;;  %v2290_v6 = vld [vmem:[#allocation7 + $0x8] sm:$0xff]   ;;  %v2285_v7 = vld [vmem:[#allocation5 + $0x20] sm:$0xff]   ;;  %v2291_v8 = vld [vmem:[#allocation7 + $0x10] sm:$0xff]   ;;  %v452_v59 = vand.u32 127, %v451_v58  ;;  %s337_s12 = scalar_lea.vmem [#allocation10], %s1758_s15  ;;  %s2995_s30 = scalar_lea.hbm %s3046_s7, %s1867_s29 }
  0x88   : > { %1970 = vmatpush3.bf16.msra.mxu0 %v2281_v1  ;;  %1990 = vmatpush3.bf16.msra.mxu1 %v2289_v4  ;;  %v2286_v9 = vld [vmem:[#allocation5 + $0x28] sm:$0xff]   ;;  %v2292_v10 = vld [vmem:[#allocation7 + $0x18] sm:$0xff]   ;;  %v2287_v11 = vld [vmem:[#allocation5 + $0x30] sm:$0xff]   ;;  %s1646_s17 = sshll.u32 %s337_s12, 4  ;;  %s1633_s9 = scalar_lea.sflag [#allocation4], %s2816_s8  ;;  %s2997_s17 = int_to_ptr.vmem [resolvable:$true] %s1646_s17 }
  0x89   : > { %1971 = vmatprep.subr.bf16.mxu0 %v2569_v0  ;;  %1991 = vmatprep.subr.bf16.mxu1 %v2569_v0  ;;  %v2293_v12 = vld [vmem:[#allocation7 + $0x20] sm:$0xff]   ;;  %v2288_v13 = vld [vmem:[#allocation5 + $0x38] sm:$0xff]   ;;  %v2294_v14 = vld [vmem:[#allocation7 + $0x28] sm:$0xff]   ;;  %vm453_vm1 = vcmp.lt.s32.totalorder %v452_v59, 5  ;;  %s2487_s23 = scalar_lea.vmem %s2997_s17, 128  ;;  %s2576_s28 = smov [#allocation10]  }
  0x8a   : > { %v2853_v15 = vld [vmem:[%s2820_s16] sm:$0xf]  ;;  %v2295_v16 = vld [vmem:[#allocation7 + $0x30] sm:$0xff]   ;;  %v2297_v18 = vld [vmem:[#allocation7 + $0x40] sm:$0xff]   ;;  %p2488_p10 = scmp.ne.s32.totalorder %s2997_s17, %s2487_s23  ;;  %s2491_s10 = sshll.u32 %s2576_s28, 4  ;;  %s2492_s10 = int_to_ptr.vmem [resolvable:$false] %s2491_s10 }
  0x8b   : > { %v2296_v17 = vld [vmem:[#allocation7 + $0x38] sm:$0xff]   ;;  %v2298_v19 = vld [vmem:[#allocation7 + $0x48] sm:$0xff]   ;;  %v2299_v20 = vld [vmem:[#allocation7 + $0x50] sm:$0xff]   ;;  %s2493_s11 = scalar_lea.vmem %s2492_s10, 256  ;;  %p2494_p12 = scmp.lt.s32.totalorder %s2997_s17, %s2492_s10 }
  0x8c   : > { %1972 = vmatpush3.bf16.msra.mxu0 %v2282_v2  ;;  %1992 = vmatpush3.bf16.msra.mxu1 %v2290_v6  ;;  %v2300_v21 = vld [vmem:[#allocation7 + $0x58] sm:$0xff]   ;;  %v2301_v22 = vld [vmem:[#allocation7 + $0x60] sm:$0xff]   ;;  %v2302_v23 = vld [vmem:[#allocation7 + $0x68] sm:$0xff]   ;;  %p2489_p3 = pnand %p2488_p10, %p2771_p5  ;;  %p2495_p1 = scmp.lt.s32.totalorder %s2493_s11, %s2487_s23 }
  0x8d   : > { %1973 = vmatprep.subr.bf16.mxu0 %v2569_v0  ;;  %1993 = vmatprep.subr.bf16.mxu1 %v2569_v0  ;;  %v2303_v24 = vld [vmem:[#allocation7 + $0x70] sm:$0xff]   ;;  %v2304_v25 = vld [vmem:[#allocation7 + $0x78] sm:$0xff]   ;;  %v2305_v26 = vld [vmem:[#allocation7 + $0x80] sm:$0xff]  }
  0x8e   : > { %v2306_v27 = vld [vmem:[#allocation7 + $0x88] sm:$0xff]   ;;  %v2307_v28 = vld [vmem:[#allocation7 + $0x90] sm:$0xff]   ;;  %v2308_v29 = vld [vmem:[#allocation7 + $0x98] sm:$0xff]   ;;  %p2490_p7 = pneg %p2489_p3  ;;  %p2496_p2 = por %p2495_p1, %p2494_p12 }
  0x8f   : > { %v2309_v30 = vld [vmem:[#allocation7 + $0xa0] sm:$0xff]   ;;  %v2310_v31 = vld [vmem:[#allocation7 + $0xa8] sm:$0xff]   ;;  %v2311_v32 = vld [vmem:[#allocation7 + $0xb0] sm:$0xff]  }
  0x90   : > { %1974 = vmatpush3.bf16.msra.mxu0 %v2283_v3  ;;  %1994 = vmatpush3.bf16.msra.mxu1 %v2291_v8  ;;  %v2312_v33 = vld [vmem:[#allocation7 + $0xb8] sm:$0xff]   ;;  %v2313_v34 = vld [vmem:[#allocation7 + $0xc0] sm:$0xff]   ;;  %v2314_v35 = vld [vmem:[#allocation7 + $0xc8] sm:$0xff]   ;;  %p2497_p4 = pnand %p2496_p2, %p2490_p7 }
  0x91   : > { %1975 = vmatprep.subr.bf16.mxu0 %v2569_v0  ;;  %1995 = vmatprep.subr.bf16.mxu1 %v2569_v0  ;;  %v2315_v36 = vld [vmem:[#allocation7 + $0xd0] sm:$0xff]   ;;  %v2316_v37 = vld [vmem:[#allocation7 + $0xd8] sm:$0xff]   ;;  %v2317_v38 = vld [vmem:[#allocation7 + $0xe0] sm:$0xff]  }
  0x92   : > { %v2329_v39 = vld [vmem:[#allocation8] sm:$0xff]   ;;  %v2318_v40 = vld [vmem:[#allocation7 + $0xe8] sm:$0xff]   ;;  %v2319_v42 = vld [vmem:[#allocation7 + $0xf0] sm:$0xff]  }
  0x93   : > { %v2330_v41 = vld [vmem:[#allocation8 + $0x8] sm:$0xff]   ;;  %v2331_v43 = vld [vmem:[#allocation8 + $0x10] sm:$0xff]   ;;  %v2320_v44 = vld [vmem:[#allocation7 + $0xf8] sm:$0xff]  }
  0x94   : > { %1976 = vmatpush3.bf16.msra.mxu0 %v2284_v5  ;;  %1996 = vmatpush3.bf16.msra.mxu1 %v2292_v10  ;;  %v2332_v45 = vld [vmem:[#allocation8 + $0x18] sm:$0xff]   ;;  %v2321_v46 = vld [vmem:[#allocation7 + $0x100] sm:$0xff]   ;;  %v2322_v48 = vld [vmem:[#allocation7 + $0x108] sm:$0xff]  }
  0x95   : > { %1977 = vmatprep.subr.bf16.mxu0 %v2569_v0  ;;  %1997 = vmatprep.subr.bf16.mxu1 %v2569_v0  ;;  %v2333_v47 = vld [vmem:[#allocation8 + $0x20] sm:$0xff]   ;;  %v2334_v49 = vld [vmem:[#allocation8 + $0x28] sm:$0xff]   ;;  %v2323_v50 = vld [vmem:[#allocation7 + $0x110] sm:$0xff]  }
  0x96   : > { %v2335_v51 = vld [vmem:[#allocation8 + $0x30] sm:$0xff]   ;;  %v2324_v52 = vld [vmem:[#allocation7 + $0x118] sm:$0xff]   ;;  %v2325_v54 = vld [vmem:[#allocation7 + $0x120] sm:$0xff]  }
  0x97   : > { %v2336_v53 = vld [vmem:[#allocation8 + $0x38] sm:$0xff]   ;;  %v2326_v55 = vld [vmem:[#allocation7 + $0x128] sm:$0xff]   ;;  %v2327_v56 = vld [vmem:[#allocation7 + $0x130] sm:$0xff]  }
  0x98   : > { %1978 = vmatpush3.bf16.msra.mxu0 %v2285_v7  ;;  %1998 = vmatpush3.bf16.msra.mxu1 %v2293_v12  ;;  %v2328_v57 = vld [vmem:[#allocation7 + $0x138] sm:$0xff]   ;;  %v2361_v59 = vld [vmem:[#allocation8 + $0x100] sm:$0xff]  }
  0x99   : > { %1979 = vmatprep.subr.bf16.mxu0 %v2569_v0  ;;  %1999 = vmatprep.subr.bf16.mxu1 %v2569_v0  ;;  %v1759_v60 = vld [vmem:[%s3041_s2] ss:$0 sm:$0xff] }
  0x9a   : > { %v1768_v4 = vld [vmem:[%s3043_s4] ss:$0 sm:$0xff] }
  0x9c   : > { %1980 = vmatpush3.bf16.msra.mxu0 %v2286_v9  ;;  %2000 = vmatpush3.bf16.msra.mxu1 %v2294_v14  ;;  %v2339_v14 = vld [vmem:[#allocation8 + $0x50] sm:$0xff]  }
  0x9d   : > { %1981 = vmatprep.subr.bf16.mxu0 %v2569_v0  ;;  %2001 = vmatprep.subr.bf16.mxu1 %v2569_v0 }
  0xa0   : > { %1982 = vmatpush3.bf16.msra.mxu0 %v2287_v11  ;;  %2002 = vmatpush3.bf16.msra.mxu1 %v2295_v16  ;;  %v2337_v11 = vld [vmem:[#allocation8 + $0x40] sm:$0xff]  }
  0xa1   : > { %1983 = vmatprep.subr.bf16.mxu0 %v2569_v0  ;;  %2003 = vmatprep.subr.bf16.mxu1 %v2569_v0  ;;  %v2341_v16 = vld [vmem:[#allocation8 + $0x60] sm:$0xff]  }
  0xa4   : > { %1984 = vmatpush3.bf16.msra.mxu0 %v2288_v13  ;;  %2004 = vmatpush3.bf16.msra.mxu1 %v2296_v17  ;;  %v2338_v13 = vld [vmem:[#allocation8 + $0x48] sm:$0xff]  }
  0xa5   : > { %2009 = vmatprep.subr.bf16.mxu0 %v2569_v0  ;;  %2029 = vmatprep.subr.bf16.mxu1 %v2569_v0  ;;  %v2342_v17 = vld [vmem:[#allocation8 + $0x68] sm:$0xff]  }
  0xa7   : > { %1986 = vmatmul.mubr.bf16.vlgmr.msra.gmra.mrb[0].mxu0 %v2853_v15  ;;  %2006 = vmatmul.mubr.bf16.vlgmr.msra.gmra.mrb[0].mxu1 %v2853_v15 }
  0xa8   : > { %2025 = vmatprep.mubr.msk.bf16.mxu0 %vm2570_vm0, %v2569_v0  ;;  %2030 = vmatpush3.bf16.msra.mxu1 %v2297_v18  ;;  %v2343_v18 = vld [vmem:[#allocation8 + $0x70] sm:$0xff]  }
  0xa9   : > { %2045 = vmatprep.mubr.msk.bf16.mxu1 %vm2570_vm0, %v2569_v0  ;;  %2031 = vmatprep.subr.bf16.mxu1 %v2569_v0 }
  0xaa   : > { %2010 = vmatpush3.bf16.msra.mxu0 %v2329_v39 }
  0xab   : > { %2011 = vmatprep.subr.bf16.mxu0 %v2569_v0 }
  0xac   : > { %2032 = vmatpush3.bf16.msra.mxu1 %v2298_v19  ;;  %v1787_v19 = vld [vmem:[%s3043_s4 + $0x1] ss:$0 sm:$0xff] }
  0xad   : > { %2033 = vmatprep.subr.bf16.mxu1 %v2569_v0 }
  0xae   : > { %2012 = vmatpush3.bf16.msra.mxu0 %v2330_v41 }
  0xaf   : > { %2013 = vmatprep.subr.bf16.mxu0 %v2569_v0 }
  0xb0   : > { %2034 = vmatpush3.bf16.msra.mxu1 %v2299_v20 }
  0xb1   : > { %2035 = vmatprep.subr.bf16.mxu1 %v2569_v0 }
  0xb2   : > { %2014 = vmatpush3.bf16.msra.mxu0 %v2331_v43  ;;  %v2353_v43 = vld [vmem:[#allocation8 + $0xc0] sm:$0xff]  }
  0xb3   : > { %2015 = vmatprep.subr.bf16.mxu0 %v2569_v0 }
  0xb4   : > { %2036 = vmatpush3.bf16.msra.mxu1 %v2300_v21  ;;  %v2344_v21 = vld [vmem:[#allocation8 + $0x78] sm:$0xff]  }
  0xb5   : > { %2037 = vmatprep.subr.bf16.mxu1 %v2569_v0 }
  0xb6   : > { %2016 = vmatpush3.bf16.msra.mxu0 %v2332_v45  ;;  %v2354_v45 = vld [vmem:[#allocation8 + $0xc8] sm:$0xff]  }
  0xb7   : > { %2017 = vmatprep.subr.bf16.mxu0 %v2569_v0 }
  0xb8   : > { %2038 = vmatpush3.bf16.msra.mxu1 %v2301_v22 }
  0xb9   : > { %2039 = vmatprep.subr.bf16.mxu1 %v2569_v0 }
  0xba   : > { %2018 = vmatpush3.bf16.msra.mxu0 %v2333_v47  ;;  %v2356_v47 = vld [vmem:[#allocation8 + $0xd8] sm:$0xff]  }
  0xbb   : > { %2019 = vmatprep.subr.bf16.mxu0 %v2569_v0 }
  0xbc   : > { %2040 = vmatpush3.bf16.msra.mxu1 %v2302_v23 }
  0xbd   : > { %2041 = vmatprep.subr.bf16.mxu1 %v2569_v0 }
  0xbe   : > { %2020 = vmatpush3.bf16.msra.mxu0 %v2334_v49  ;;  %v2358_v49 = vld [vmem:[#allocation8 + $0xe8] sm:$0xff]  }
  0xbf   : > { %2021 = vmatprep.subr.bf16.mxu0 %v2569_v0 }
  0xc0   : > { %2042 = vmatpush3.bf16.msra.mxu1 %v2303_v24 }
  0xc1   : > { %2043 = vmatprep.subr.bf16.mxu1 %v2569_v0 }
  0xc2   : > { %2022 = vmatpush3.bf16.msra.mxu0 %v2335_v51  ;;  %v1827_v51 = vld [vmem:[%s3043_s4 + $0x3] ss:$0 sm:$0xff] }
  0xc3   : > { %2023 = vmatprep.subr.bf16.mxu0 %v2569_v0 }
  0xc4   : > { %2044 = vmatpush3.bf16.msra.mxu1 %v2304_v25 }
  0xc5   : > { %2069 = vmatprep.subr.bf16.mxu1 %v2569_v0 }
  0xc6   : > { %2024 = vmatpush3.bf16.msra.mxu0 %v2336_v53  ;;  %v2360_v53 = vld [vmem:[#allocation8 + $0xf8] sm:$0xff]  }
  0xc7   : > { %2046 = vmatmul.mubr.bf16.vlgmr.msra.gmra.mrb[4].mxu1 %v2853_v15  ;;  %2049 = vmatprep.subr.bf16.mxu0 %v2569_v0 }
  0xc8   : > { %2070 = vmatpush3.bf16.msra.mxu1 %v2305_v26  ;;  %2085 = vmatprep.mubr.msk.bf16.mxu1 %vm2570_vm0, %v2569_v0 }
  0xc9   : > { %2071 = vmatprep.subr.bf16.mxu1 %v2569_v0 }
  0xcc   : > { %2072 = vmatpush3.bf16.msra.mxu1 %v2306_v27  ;;  %v2345_v27 = vld [vmem:[#allocation8 + $0x80] sm:$0xff]  }
  0xcd   : > { %2073 = vmatprep.subr.bf16.mxu1 %v2569_v0 }
  0xd0   : > { %2074 = vmatpush3.bf16.msra.mxu1 %v2307_v28 }
  0xd1   : > { %2075 = vmatprep.subr.bf16.mxu1 %v2569_v0 }
  0xd4   : > { %2076 = vmatpush3.bf16.msra.mxu1 %v2308_v29  ;;  %v2346_v29 = vld [vmem:[#allocation8 + $0x88] sm:$0xff]  }
  0xd5   : > { %2077 = vmatprep.subr.bf16.mxu1 %v2569_v0 }
  0xd8   : > { %2078 = vmatpush3.bf16.msra.mxu1 %v2309_v30  ;;  %v2347_v30 = vld [vmem:[#allocation8 + $0x90] sm:$0xff]  }
  0xd9   : > { %2079 = vmatprep.subr.bf16.mxu1 %v2569_v0 }
  0xdc   : > { %2080 = vmatpush3.bf16.msra.mxu1 %v2310_v31  ;;  %v2348_v31 = vld [vmem:[#allocation8 + $0x98] sm:$0xff]  }
  0xdd   : > { %2081 = vmatprep.subr.bf16.mxu1 %v2569_v0 }
  0xe0   : > { %2082 = vmatpush3.bf16.msra.mxu1 %v2311_v32  ;;  %v2349_v32 = vld [vmem:[#allocation8 + $0xa0] sm:$0xff]  }
  0xe1   : > { %2083 = vmatprep.subr.bf16.mxu1 %v2569_v0 }
  0xe4   : > { %2084 = vmatpush3.bf16.msra.mxu1 %v2312_v33  ;;  %v2350_v33 = vld [vmem:[#allocation8 + $0xa8] sm:$0xff]  }
  0xe5   : > { %2109 = vmatprep.subr.bf16.mxu1 %v2569_v0 }
  0xe7   : > { %2086 = vmatmul.mubr.bf16.vlgmr.msra.gmra.mrb[8].mxu1 %v2853_v15 }
  0xe8   : > { %2110 = vmatpush3.bf16.msra.mxu1 %v2313_v34  ;;  %2125 = vmatprep.mubr.msk.bf16.mxu1 %vm2570_vm0, %v2569_v0  ;;  %v2351_v34 = vld [vmem:[#allocation8 + $0xb0] sm:$0xff]  }
  0xe9   : > { %2111 = vmatprep.subr.bf16.mxu1 %v2569_v0 }
  0xec   : > { %2112 = vmatpush3.bf16.msra.mxu1 %v2314_v35  ;;  %v1807_v35 = vld [vmem:[%s3043_s4 + $0x2] ss:$0 sm:$0xff] }
  0xed   : > { %2113 = vmatprep.subr.bf16.mxu1 %v2569_v0 }
  0xf0   : > { %2114 = vmatpush3.bf16.msra.mxu1 %v2315_v36 }
  0xf1   : > { %2115 = vmatprep.subr.bf16.mxu1 %v2569_v0 }
  0xf4   : > { %2116 = vmatpush3.bf16.msra.mxu1 %v2316_v37  ;;  %v2352_v37 = vld [vmem:[#allocation8 + $0xb8] sm:$0xff]  }
  0xf5   : > { %2117 = vmatprep.subr.bf16.mxu1 %v2569_v0 }
  0xf8   : > { %2118 = vmatpush3.bf16.msra.mxu1 %v2317_v38 }
  0xf9   : > { %2119 = vmatprep.subr.bf16.mxu1 %v2569_v0 }
  0xfc   : > { %2120 = vmatpush3.bf16.msra.mxu1 %v2318_v40 }
  0xfd   : > { %2121 = vmatprep.subr.bf16.mxu1 %v2569_v0 }
 0x100   : > { %2122 = vmatpush3.bf16.msra.mxu1 %v2319_v42 }
 0x101   : > { %2123 = vmatprep.subr.bf16.mxu1 %v2569_v0 }
 0x104   : > { %2124 = vmatpush3.bf16.msra.mxu1 %v2320_v44 }
 0x105   : > { %2149 = vmatprep.subr.bf16.mxu1 %v2569_v0 }
 0x107   : > { %2126 = vmatmul.mubr.bf16.vlgmr.msra.gmra.mrb[12].mxu1 %v2853_v15 }
 0x108   : > { %2150 = vmatpush3.bf16.msra.mxu1 %v2321_v46  ;;  %2165 = vmatprep.mubr.msk.bf16.mxu1 %vm2570_vm0, %v2569_v0  ;;  %v2355_v46 = vld [vmem:[#allocation8 + $0xd0] sm:$0xff]  }
 0x109   : > { %2151 = vmatprep.subr.bf16.mxu1 %v2569_v0 }
 0x10c   : > { %2152 = vmatpush3.bf16.msra.mxu1 %v2322_v48  ;;  %v2357_v48 = vld [vmem:[#allocation8 + $0xe0] sm:$0xff]  }
 0x10d   : > { %2153 = vmatprep.subr.bf16.mxu1 %v2569_v0 }
 0x110   : > { %2154 = vmatpush3.bf16.msra.mxu1 %v2323_v50  ;;  %v2359_v50 = vld [vmem:[#allocation8 + $0xf0] sm:$0xff]  }
 0x111   : > { %2155 = vmatprep.subr.bf16.mxu1 %v2569_v0 }
 0x114   : > { %2156 = vmatpush3.bf16.msra.mxu1 %v2324_v52 }
 0x115   : > { %2157 = vmatprep.subr.bf16.mxu1 %v2569_v0 }
 0x118   : > { %2158 = vmatpush3.bf16.msra.mxu1 %v2325_v54 }
 0x119   : > { %2159 = vmatprep.subr.bf16.mxu1 %v2569_v0 }
 0x11c   : > { %2160 = vmatpush3.bf16.msra.mxu1 %v2326_v55 }
 0x11d   : > { %2161 = vmatprep.subr.bf16.mxu1 %v2569_v0 }
 0x120   : > { %2162 = vmatpush3.bf16.msra.mxu1 %v2327_v56 }
 0x121   : > { %2163 = vmatprep.subr.bf16.mxu1 %v2569_v0 }
 0x124   : > { %2164 = vmatpush3.bf16.msra.mxu1 %v2328_v57 }
 0x127   : > { %2166 = vmatmul.mubr.bf16.vlgmr.msra.gmra.mrb[16].mxu1 %v2853_v15  ;;  %v2340_v15 = vld [vmem:[#allocation8 + $0x58] sm:$0xff]  }
 0x17a   : > { %v445_v61 = vpop.f32.mrb[0].mxu0  ;;  %v569_v5 = vpop.f32.mrb[0].mxu1 }
 0x17b   : > { %v446_v62 = vadd.f32 %v1759_v60, %v445_v61  ;;  %v1987_v63 = vpop.f32.mrb[1].mxu0  ;;  %v570_v6 = vadd.f32 %v1768_v4, %v569_v5  ;;  %v2007_v7 = vpop.f32.mrb[1].mxu1  ;;  %v2362_v61 = vld [vmem:[#allocation8 + $0x108] sm:$0xff]   ;;  %v2367_v4 = vld [vmem:[#allocation8 + $0x130] sm:$0xff]   ;;  %v1847_v5 = vld [vmem:[%s3043_s4 + $0x4] ss:$0 sm:$0xff] }
 0x17c   : > { %v448_v1 = vpop.f32.mrb[2].mxu0  ;;  %v572_v8 = vpop.f32.mrb[2].mxu1  ;;  %v2364_v63 = vld [vmem:[#allocation8 + $0x118] sm:$0xff]  }
 0x17d   : > { %v1988_v2 = vpop.f32.mrb[3].mxu0  ;;  %v2917_v3 = vsel %vm453_vm1, %v446_v62, -1e+30  ;;  %v575_v9 = vmax.f32 %v570_v6, 0.0  ;;  %v2008_v10 = vpop.f32.mrb[3].mxu1  ;;  %v2363_v62 = vld [vmem:[#allocation8 + $0x110] sm:$0xff]  }
 0x17e   : > { %455 = vmax.xlane.f32.xlu0 %v2917_v3  ;;  %v2365_v1 = vld [vmem:[#allocation8 + $0x120] sm:$0xff]   ;;  %v2366_v2 = vld [vmem:[#allocation8 + $0x128] sm:$0xff]   ;;  %v2368_v7 = vld [vmem:[#allocation8 + $0x138] sm:$0xff]  }
 0x17f   : > { %v576_v12 = vpack.c.bf16 %v575_v9, %v575_v9 }
 0x181   : > { %2026 = vmatmul.mubr.bf16.vlgmr.msra.gmra.mrb[4].mxu0 %v576_v12 }
 0x182   : > { %2050 = vmatpush3.bf16.msra.mxu0 %v2337_v11  ;;  %2065 = vmatprep.mubr.msk.bf16.mxu0 %vm2570_vm0, %v2569_v0 }
 0x183   : > { %2051 = vmatprep.subr.bf16.mxu0 %v2569_v0 }
 0x186   : > { %2052 = vmatpush3.bf16.msra.mxu0 %v2338_v13 }
 0x187   : > { %2053 = vmatprep.subr.bf16.mxu0 %v2569_v0 }
 0x18a   : > { %2054 = vmatpush3.bf16.msra.mxu0 %v2339_v14 }
 0x18b   : > { %2055 = vmatprep.subr.bf16.mxu0 %v2569_v0 }
 0x18e   : > { %2056 = vmatpush3.bf16.msra.mxu0 %v2340_v15 }
 0x18f   : > { %2057 = vmatprep.subr.bf16.mxu0 %v2569_v0 }
 0x192   : > { %2058 = vmatpush3.bf16.msra.mxu0 %v2341_v16 }
 0x193   : > { %2059 = vmatprep.subr.bf16.mxu0 %v2569_v0 }
 0x196   : > { %2060 = vmatpush3.bf16.msra.mxu0 %v2342_v17 }
 0x197   : > { %2061 = vmatprep.subr.bf16.mxu0 %v2569_v0 }
 0x19a   : > { %2062 = vmatpush3.bf16.msra.mxu0 %v2343_v18  ;;  %v802_v20 = vpop.f32.mrb[4].mxu1  ;;  %v2571_v18 = vmov 2  }
 0x19b   : > { %v803_v22 = vadd.f32 %v1787_v19, %v802_v20  ;;  %v2047_v23 = vpop.f32.mrb[5].mxu1  ;;  %2063 = vmatprep.subr.bf16.mxu0 %v2569_v0  ;;  %2277 = vset.pattern.permute.xlu0 %v2571_v18  ;;  %v2572_v19 = vmov 0  }
 0x19c   : > { %v805_v24 = vpop.f32.mrb[6].mxu1  ;;  %2275 = vset.pattern.permute.xlu1 %v2572_v19 }
 0x19d   : > { %v808_v25 = vmax.f32 %v803_v22, 0.0  ;;  %v2048_v26 = vpop.f32.mrb[7].mxu1 }
 0x19e   : > { %2064 = vmatpush3.bf16.msra.mxu0 %v2344_v21 }
 0x19f   : > { %v809_v28 = vpack.c.bf16 %v808_v25, %v808_v25  ;;  %2089 = vmatprep.subr.bf16.mxu0 %v2569_v0 }
 0x1a1   : > { %2066 = vmatmul.mubr.bf16.vlgmr.msra.gmra.mrb[8].mxu0 %v809_v28 }
 0x1a2   : > { %2090 = vmatpush3.bf16.msra.mxu0 %v2345_v27  ;;  %2105 = vmatprep.mubr.msk.bf16.mxu0 %vm2570_vm0, %v2569_v0 }
 0x1a3   : > { %2091 = vmatprep.subr.bf16.mxu0 %v2569_v0 }
 0x1a6   : > { %2092 = vmatpush3.bf16.msra.mxu0 %v2346_v29 }
 0x1a7   : > { %2093 = vmatprep.subr.bf16.mxu0 %v2569_v0 }
 0x1aa   : > { %2094 = vmatpush3.bf16.msra.mxu0 %v2347_v30 }
 0x1ab   : > { %2095 = vmatprep.subr.bf16.mxu0 %v2569_v0 }
 0x1ae   : > { %2096 = vmatpush3.bf16.msra.mxu0 %v2348_v31 }
 0x1af   : > { %2097 = vmatprep.subr.bf16.mxu0 %v2569_v0 }
 0x1b2   : > { %2098 = vmatpush3.bf16.msra.mxu0 %v2349_v32 }
 0x1b3   : > { %2099 = vmatprep.subr.bf16.mxu0 %v2569_v0 }
 0x1b6   : > { %2100 = vmatpush3.bf16.msra.mxu0 %v2350_v33  ;;  %v2573_v33 = vmov 1  }
 0x1b7   : > { %2101 = vmatprep.subr.bf16.mxu0 %v2569_v0 }
 0x1ba   : > { %2102 = vmatpush3.bf16.msra.mxu0 %v2351_v34  ;;  %v1036_v36 = vpop.f32.mrb[8].mxu1  ;;  %v2574_v34 = vmov 4  }
 0x1bb   : > { %v1037_v38 = vadd.f32 %v1807_v35, %v1036_v36  ;;  %v2087_v39 = vpop.f32.mrb[9].mxu1  ;;  %2103 = vmatprep.subr.bf16.mxu0 %v2569_v0 }
 0x1bc   : > { %v1039_v40 = vpop.f32.mrb[10].mxu1 }
 0x1bd   : > { %v1042_v41 = vmax.f32 %v1037_v38, 0.0  ;;  %v2088_v42 = vpop.f32.mrb[11].mxu1 }
 0x1be   : > { %2104 = vmatpush3.bf16.msra.mxu0 %v2352_v37  ;;  %v2575_v37 = vmov 3  }
 0x1bf   : > { %v1043_v44 = vpack.c.bf16 %v1042_v41, %v1042_v41  ;;  %2129 = vmatprep.subr.bf16.mxu0 %v2569_v0 }
 0x1c1   : > { %2106 = vmatmul.mubr.bf16.vlgmr.msra.gmra.mrb[12].mxu0 %v1043_v44 }
 0x1c2   : > { %2130 = vmatpush3.bf16.msra.mxu0 %v2353_v43  ;;  %2145 = vmatprep.mubr.msk.bf16.mxu0 %vm2570_vm0, %v2569_v0 }
 0x1c3   : > { %2131 = vmatprep.subr.bf16.mxu0 %v2569_v0 }
 0x1c6   : > { %2132 = vmatpush3.bf16.msra.mxu0 %v2354_v45  ;;  %v1777_v45 = vld [vmem:[%s3045_s6] ss:$0 sm:$0xff] }
 0x1c7   : > { %2133 = vmatprep.subr.bf16.mxu0 %v2569_v0 }
 0x1ca   : > { %2134 = vmatpush3.bf16.msra.mxu0 %v2355_v46  ;;  %v1797_v46 = vld [vmem:[%s3045_s6 + $0x1] ss:$0 sm:$0xff] }
 0x1cb   : > { %2135 = vmatprep.subr.bf16.mxu0 %v2569_v0 }
 0x1ce   : > { %2136 = vmatpush3.bf16.msra.mxu0 %v2356_v47  ;;  %v1817_v47 = vld [vmem:[%s3045_s6 + $0x2] ss:$0 sm:$0xff] }
 0x1cf   : > { %2137 = vmatprep.subr.bf16.mxu0 %v2569_v0 }
 0x1d2   : > { %2138 = vmatpush3.bf16.msra.mxu0 %v2357_v48 }
 0x1d3   : > { %2139 = vmatprep.subr.bf16.mxu0 %v2569_v0 }
 0x1d6   : > { %2140 = vmatpush3.bf16.msra.mxu0 %v2358_v49 }
 0x1d7   : > { %2141 = vmatprep.subr.bf16.mxu0 %v2569_v0 }
 0x1da   : > { %2142 = vmatpush3.bf16.msra.mxu0 %v2359_v50  ;;  %v1270_v52 = vpop.f32.mrb[12].mxu1 }
 0x1db   : > { %v1271_v54 = vadd.f32 %v1827_v51, %v1270_v52  ;;  %v2127_v55 = vpop.f32.mrb[13].mxu1  ;;  %2143 = vmatprep.subr.bf16.mxu0 %v2569_v0 }
 0x1dc   : > { %v1273_v56 = vpop.f32.mrb[14].mxu1 }
 0x1dd   : > { %v1276_v57 = vmax.f32 %v1271_v54, 0.0  ;;  %v2128_v58 = vpop.f32.mrb[15].mxu1 }
 0x1de   : > { %2144 = vmatpush3.bf16.msra.mxu0 %v2360_v53  ;;  %v1837_v53 = vld [vmem:[%s3045_s6 + $0x3] ss:$0 sm:$0xff] }
 0x1df   : > { %v1277_v60 = vpack.c.bf16 %v1276_v57, %v1276_v57  ;;  %2169 = vmatprep.subr.bf16.mxu0 %v2569_v0 }
 0x1e1   : > { %2146 = vmatmul.mubr.bf16.vlgmr.msra.gmra.mrb[16].mxu0 %v1277_v60 }
 0x1e2   : > { %2170 = vmatpush3.bf16.msra.mxu0 %v2361_v59  ;;  %2185 = vmatprep.mubr.msk.bf16.mxu0 %vm2570_vm0, %v2569_v0  ;;  %v1857_v59 = vld [vmem:[%s3045_s6 + $0x4] ss:$0 sm:$0xff] }
 0x1e3   : > { %2171 = vmatprep.subr.bf16.mxu0 %v2569_v0 }
 0x1e6   : > { %2172 = vmatpush3.bf16.msra.mxu0 %v2362_v61 }
 0x1e7   : > { %2173 = vmatprep.subr.bf16.mxu0 %v2569_v0 }
 0x1ea   : > { %2174 = vmatpush3.bf16.msra.mxu0 %v2363_v62 }
 0x1eb   : > { %2175 = vmatprep.subr.bf16.mxu0 %v2569_v0 }
 0x1ee   : > { %2176 = vmatpush3.bf16.msra.mxu0 %v2364_v63 }
 0x1ef   : > { %2177 = vmatprep.subr.bf16.mxu0 %v2569_v0 }
 0x1f2   : > { %2178 = vmatpush3.bf16.msra.mxu0 %v2365_v1 }
 0x1f3   : > { %2179 = vmatprep.subr.bf16.mxu0 %v2569_v0 }
 0x1f6   : > { %2180 = vmatpush3.bf16.msra.mxu0 %v2366_v2 }
 0x1f7   : > { %2181 = vmatprep.subr.bf16.mxu0 %v2569_v0 }
 0x1fa   : > { %v1504_v6 = vpop.f32.mrb[16].mxu1  ;;  %2182 = vmatpush3.bf16.msra.mxu0 %v2367_v4 }
 0x1fb   : > { %v1505_v8 = vadd.f32 %v1847_v5, %v1504_v6  ;;  %v2167_v9 = vpop.f32.mrb[17].mxu1  ;;  %2183 = vmatprep.subr.bf16.mxu0 %v2569_v0 }
 0x1fc   : > { %v1507_v10 = vpop.f32.mrb[18].mxu1 }
 0x1fd   : > { %v1510_v11 = vmax.f32 %v1505_v8, 0.0  ;;  %v2168_v12 = vpop.f32.mrb[19].mxu1 }
 0x1fe   : > { %2184 = vmatpush3.bf16.msra.mxu0 %v2368_v7 }
 0x1ff   : > { %v1511_v13 = vpack.c.bf16 %v1510_v11, %v1510_v11 }
 0x201   : > { %2186 = vmatmul.mubr.bf16.vlgmr.msra.gmra.mrb[20].mxu0 %v1511_v13 }
 0x20b   : > { %v456_v14 = vpop.xlane.xlu0 %455 }
 0x20c   : > { %v457_v15 = vsub.f32 %v2917_v3, %v456_v14 }
 0x20e   : > { %v458_v16 = vmul.f32 1.442695, %v457_v15 }
 0x210   : > { %2369 = vpow2.f32 %v458_v16 }
 0x21a   : > { %v2370_v17 = vpop.eup %2369 }
 0x21b   : > { %460 = vadd.xlane.f32.xlu0 %v2370_v17 }
 0x254   : > { %v682_v20 = vpop.f32.mrb[4].mxu0 }
 0x255   : > { %v2027_v21 = vpop.f32.mrb[5].mxu0  ;;  %v683_v48 = vadd.f32 %v1777_v45, %v682_v20 }
 0x256   : > { %v685_v0 = vpop.f32.mrb[6].mxu0 }
 0x257   : > { %v2028_v22 = vpop.f32.mrb[7].mxu0 }
 0x274   : > { %v917_v23 = vpop.f32.mrb[8].mxu0 }
 0x275   : > { %v2067_v24 = vpop.f32.mrb[9].mxu0  ;;  %v918_v49 = vadd.f32 %v1797_v46, %v917_v23 }
 0x276   : > { %v920_v25 = vpop.f32.mrb[10].mxu0 }
 0x277   : > { %v2068_v26 = vpop.f32.mrb[11].mxu0 }
 0x294   : > { %v1151_v27 = vpop.f32.mrb[12].mxu0 }
 0x295   : > { %v2107_v28 = vpop.f32.mrb[13].mxu0  ;;  %v1152_v52 = vadd.f32 %v1817_v47, %v1151_v27 }
 0x296   : > { %v1154_v29 = vpop.f32.mrb[14].mxu0 }
 0x297   : > { %v2108_v3 = vpop.f32.mrb[15].mxu0 }
 0x2a8   : > { %v461_v30 = vpop.xlane.xlu0 %460 }
 0x2a9   : > { %2371 = vrcp.f32 %v461_v30 }
 0x2b3   : > { %v2372_v31 = vpop.eup %2371 }
 0x2b4   : > { %v463_v32 = vmul.f32 %v2372_v31, %v2370_v17  ;;  %v1385_v35 = vpop.f32.mrb[16].mxu0 }
 0x2b5   : > { %v2147_v36 = vpop.f32.mrb[17].mxu0  ;;  %v1386_v58 = vadd.f32 %v1837_v53, %v1385_v35 }
 0x2b6   : > { %1158 = vperm.xlu0 %2277, %v463_v32   ;;  %690 = vperm.xlu1 %2275, %v463_v32   ;;  %v1388_v38 = vpop.f32.mrb[18].mxu0 }
 0x2b7   : > { %v2148_v39 = vpop.f32.mrb[19].mxu0 }
 0x2ba   : > { %2276 = vset.pattern.permute.xlu1 %v2573_v33  ;;  %2280 = vset.pattern.permute.xlu0 %v2574_v34 }
 0x2bb   : > { %924 = vperm.xlu1 %2276, %v463_v32  }
 0x2bf   : > { %2278 = vset.pattern.permute.xlu1 %v2575_v37 }
 0x2c0   : > { %1392 = vperm.xlu1 %2278, %v463_v32  }
 0x2c4   : > { %2279 = vset.pattern.permute.xlu1 %v2574_v34 }
 0x2c5   : > { %1626 = vperm.xlu1 %2279, %v463_v32  }
 0x2d4   : > { %v1619_v40 = vpop.f32.mrb[20].mxu0 }
 0x2d5   : > { %v2187_v41 = vpop.f32.mrb[21].mxu0  ;;  %v1620_v63 = vadd.f32 %v1857_v59, %v1619_v40 }
 0x2d6   : > { %v1622_v42 = vpop.f32.mrb[22].mxu0 }
 0x2d7   : > { %v2188_v43 = vpop.f32.mrb[23].mxu0 }
 0x335   : > { %v691_v44 = vpop.permute.xlu1 %690  ;;  %v1159_v50 = vpop.permute.xlu0 %1158 }
 0x336   : > { %v693_v54 = vmul.f32 %v691_v44, %v683_v48  ;;  %v1161_v56 = vmul.f32 %v1159_v50, %v1152_v52 }
 0x33a   : > { %v925_v51 = vpop.permute.xlu1 %924 }
 0x33b   : > { %v927_v55 = vmul.f32 %v925_v51, %v918_v49 }
 0x33d   : > { %v928_v57 = vadd.f32 %v927_v55, %v693_v54 }
 0x33f   : > { %v1393_v60 = vpop.permute.xlu1 %1392  ;;  %v1162_v61 = vadd.f32 %v1161_v56, %v928_v57 }
 0x340   : > { %v1395_v62 = vmul.f32 %v1393_v60, %v1386_v58 }
 0x342   : > { %v1396_v1 = vadd.f32 %v1395_v62, %v1162_v61 }
 0x344   : > { %v1627_v2 = vpop.permute.xlu1 %1626 }
 0x345   : > { %v1629_v4 = vmul.f32 %v1627_v2, %v1620_v63 }
 0x347   : > { %v1630_v5 = vadd.f32 %v1629_v4, %v1396_v1 }
 0x349   : > { %1631 = vst [vmem:[%s337_s12] sm:$0xff] %v1630_v5 }
 0x34a   : > { %2500 = shalt.err (!%p2497_p4)
}
 0x34b   : > { %s2501_s8 = scalar_lea.hbm %s2995_s30, 128  ;;  %s2505_s20 = scalar_lea.hbm %s3046_s7, 256 }
 0x34c   : > { %p2502_p0 = scmp.ne.s32.totalorder %s2995_s30, %s2501_s8  ;;  %p2506_p8 = scmp.lt.u32.totalorder %s2995_s30, %s3046_s7 }
 0x34d   : > { %p2507_p13 = scmp.lt.u32.totalorder %s2505_s20, %s2501_s8  ;;  %p2509_p10 = scmp.lt.u32.totalorder %s2501_s8, %s2995_s30 }
 0x34e   : > { %p2503_p9 = pnand %p2502_p0, %p2771_p5 }
 0x34f   : > { %p2508_p6 = por %p2507_p13, %p2506_p8 }
 0x350   : > { %p2504_p11 = pneg %p2503_p9 }
 0x351   : > { %p2510_p3 = por %p2509_p10, %p2508_p6 }
 0x353   : > { %p2511_p7 = pnand %p2510_p3, %p2504_p11 }
 0x355   : > { %2514 = shalt.err (!%p2511_p7)
}
 0x356   : > { %2203 = dma.vmem_to_hbm [thread:$0]  (%p2771_p5), %s2997_s17, 128, %s2995_s30, %s1633_s9  }
 0x357 PF: > { %s3066_s12 = sld [smem:[#allocation15_spill]]  ;;  %s1658_s21 = sand.u32 1, %s2549_s24  }
 0x358   : > { %p3068_p1 = scmp.ge.s32.totalorder %s2561_s27, 2  ;;  %s1659_s16 = scalar_lea.sflag [#allocation4], %s1658_s21 }
 0x35d   : > { %p3067_p12 = scmp.ne.s32.totalorder %s3066_s12, 0 }
 0x35f   : > { %p2220_p2 = pnand %p3068_p1, %p3067_p12 }
 0x361   : > { %2544 = dma.done.wait (!%p2220_p2), %s1659_s16, 128  }
 0x362   : > { %2546 = vsyncadd (!%p2220_p2), %s1659_s16, 4294967168  ;;  %p22_p4 = scmp.ge.s32.totalorder %s2757_s22, 4   ;;  %s3069_s24 = smov %s2553_s25 }
 0x363   : > { %s3070_s25 = smov %s2557_s26  ;;  %s3071_s26 = smov %s2767_s18 }
 0x364   : > { %s3072_s27 = smov %s2757_s22  ;;  %24 = sbr.rel (!%p22_p4) target bundleno = 7 (0x7), region = 121 }
 0x36b   :  { %1664 = vsyncpa [#allocation3], 1 }
 0x36c   :  { %1666 = vsyncpa [#allocation3 + $0x1], 1 }
 0x36d   :  { %1667 = vsyncpa [#allocation6], 1 }
 0x36e   :  { %1668 = vsyncpa [#allocation9], 1 }
 0x36f   :  { %1669 = vsyncpa [#allocation4], 1 }
 0x370   :  { %1671 = vsyncpa [#allocation4 + $0x1], 1 }

</bundles_post_ra>
